<compile_context>
chip_gen: v7x
topology: tpu7x:2x2x1
jax: 0.10.0
libtpu: 0.0.40
codegen_flags: <defaults>
</compile_context>

<pallas_src>
import jax
import jax.numpy as jnp
from jax.experimental import pallas as pl
from jax.experimental.pallas import tpu as pltpu


def sbert_head_kernel(_nt1_ref, _nt2_ref,        # scalar-prefetch (used by index_maps)
                      len1_ref, len2_ref,        # [tb, 1] int32 valid token counts
                      h1_ref, h2_ref,            # [tb, ts, H] hidden states (bf16/f32)
                      w_ref, b_ref,              # [3H, 2], [1, 2] final Linear params
                      o_ref,                     # [tb, 2] logits
                      acc1_ref, acc2_ref):       # [tb, H] f32 scratch accumulators
    k = pl.program_id(1)
    tb, ts, H = h1_ref.shape

    @pl.when(k == 0)
    def _init():
        acc1_ref[...] = jnp.zeros_like(acc1_ref)
        acc2_ref[...] = jnp.zeros_like(acc2_ref)

    # Rebuild this tile's attention mask from the valid lengths (uses the real
    # grid position, so clamped/repeated padded tiles get an all-zero mask).
    pos = k * ts + jax.lax.broadcasted_iota(jnp.int32, (tb, ts), 1)
    m1 = (pos < len1_ref[...]).astype(jnp.float32)
    m2 = (pos < len2_ref[...]).astype(jnp.float32)

    # Accumulate masked sums in f32 (inputs may be bf16; f32 VPU math is safe
    # on v5e which has no bf16 VALU path, and free at the HBM-bound point).
    h1 = h1_ref[...].astype(jnp.float32)
    h2 = h2_ref[...].astype(jnp.float32)
    acc1_ref[...] += jnp.sum(h1 * m1[:, :, None], axis=1)
    acc2_ref[...] += jnp.sum(h2 * m2[:, :, None], axis=1)

    @pl.when(k == pl.num_programs(1) - 1)
    def _finalize():
        # divisor = valid length (clamped so an all-padding row gives 0, not NaN)
        inv1 = 1.0 / jnp.maximum(len1_ref[...].astype(jnp.float32), 1.0)
        inv2 = 1.0 / jnp.maximum(len2_ref[...].astype(jnp.float32), 1.0)
        p1 = acc1_ref[...] * inv1
        p2 = acc2_ref[...] * inv2
        diff = jnp.abs(p1 - p2)
        # concat([p1, p2, diff], -1) @ W + b as three matmuls on ref slices
        out = (jnp.dot(p1, w_ref[0:H, :], preferred_element_type=jnp.float32)
               + jnp.dot(p2, w_ref[H:2 * H, :], preferred_element_type=jnp.float32)
               + jnp.dot(diff, w_ref[2 * H:3 * H, :], preferred_element_type=jnp.float32)
               + b_ref[...])
        o_ref[...] = out.astype(o_ref.dtype)


def _vmem_capacity_bytes():
    try:
        return int(pltpu.get_tpu_info().vmem_capacity_bytes)
    except Exception:
        return 64 * 1024 * 1024  # conservative fallback (v7x per-TC VMEM)


def sentence_bert_head(h1, h2, mask1, mask2, w, b, *, tb=None, ts=None):
    """h1/h2: [B,S,H] BERT last_hidden_state; mask1/mask2: [B,S] attention masks;
    w: [3H,2] (input-major, i.e. transposed vs PyTorch [out,in]); b: [1,2]."""
    B, S, H = h1.shape
    assert h2.shape == (B, S, H)
    assert mask1.shape == (B, S) and mask2.shape == (B, S)
    assert w.shape == (3 * H, 2) and b.shape == (1, 2)

    # Valid-token counts.  Assumes the tokenizer's standard right-padded
    # attention masks (trailing zeros), in which case the count is both the
    # mean-pool divisor and lets the kernel rebuild the mask tile from an iota
    # instead of streaming [B,S] masks from HBM.
    len1 = jnp.sum(mask1, axis=1).astype(jnp.int32)[:, None]   # [B, 1]
    len2 = jnp.sum(mask2, axis=1).astype(jnp.int32)[:, None]   # [B, 1]

    vmem_cap = _vmem_capacity_bytes()
    vmem_limit = min((3 * vmem_cap) // 4, 100 * 1024 * 1024)

    itemsize = jnp.dtype(h1.dtype).itemsize
    if tb is None:
        tb = B if B <= 8 else 8
    if ts is None:
        # 2 hidden inputs x 2 pipeline buffers must fit in ~half the scoped VMEM.
        ts = S
        budget = vmem_limit // 2
        while 4 * tb * ts * H * itemsize > budget:
            nts = ts // 2
            if nts % 8 != 0 or S % nts != 0:
                break
            ts = nts
    assert B % tb == 0, "batch must be divisible by the batch tile"
    assert S % ts == 0, "sequence length must be divisible by the seq tile"

    nbt, nst = B // tb, S // ts

    # Per-batch-tile number of seq tiles that contain any valid tokens.  The
    # hidden-state index_maps clamp to this so fully-padded seq tiles repeat
    # the previous block index (DMA elided); their zero mask contributes 0.
    nt1 = ((jnp.max(len1.reshape(nbt, tb), axis=1) + ts - 1) // ts).astype(jnp.int32)
    nt2 = ((jnp.max(len2.reshape(nbt, tb), axis=1) + ts - 1) // ts).astype(jnp.int32)

    def h_index_map(which):
        def index_map(i, k, nt1_ref, nt2_ref):
            nt = nt1_ref if which == 0 else nt2_ref
            kk = jnp.maximum(jnp.minimum(k, nt[i] - 1), 0)
            return (i, kk, 0)
        return index_map

    grid_spec = pltpu.PrefetchScalarGridSpec(
        num_scalar_prefetch=2,
        grid=(nbt, nst),
        in_specs=[
            pl.BlockSpec((tb, 1), lambda i, k, nt1, nt2: (i, 0)),       # len1
            pl.BlockSpec((tb, 1), lambda i, k, nt1, nt2: (i, 0)),       # len2
            pl.BlockSpec((tb, ts, H), h_index_map(0)),                  # h1
            pl.BlockSpec((tb, ts, H), h_index_map(1)),                  # h2
            pl.BlockSpec((3 * H, 2), lambda i, k, nt1, nt2: (0, 0)),    # w (resident)
            pl.BlockSpec((1, 2), lambda i, k, nt1, nt2: (0, 0)),        # b (resident)
        ],
        out_specs=pl.BlockSpec((tb, 2), lambda i, k, nt1, nt2: (i, 0)),
        scratch_shapes=[pltpu.VMEM((tb, H), jnp.float32),
                        pltpu.VMEM((tb, H), jnp.float32)],
    )

    return pl.pallas_call(
        sbert_head_kernel,
        out_shape=jax.ShapeDtypeStruct((B, 2), jnp.float32),
        grid_spec=grid_spec,
        compiler_params=pltpu.CompilerParams(
            dimension_semantics=("parallel", "arbitrary"),
            vmem_limit_bytes=vmem_limit),
    )(nt1, nt2, len1, len2, h1, h2, w, b)


def reference_head(h1, h2, m1, m2, w, b):
    h1 = h1.astype(jnp.float32)
    h2 = h2.astype(jnp.float32)
    p1 = jnp.sum(h1 * m1[:, :, None], axis=1) / jnp.sum(m1, axis=1, keepdims=True)
    p2 = jnp.sum(h2 * m2[:, :, None], axis=1) / jnp.sum(m2, axis=1, keepdims=True)
    diff = jnp.abs(p1 - p2)
    feat = jnp.concatenate([p1, p2, diff], axis=-1)
    return feat @ w + b


if __name__ == "__main__":
    B, S, H = 2, 8, 32  # small synthetic shapes: batch=2, seq=8, hidden=32

    key = jax.random.PRNGKey(0)
    k1, k2, kw, kb = jax.random.split(key, 4)

    # synthetic "BERT last_hidden_state" for the two sentences (bf16, BERT-native)
    h1 = jax.random.normal(k1, (B, S, H), dtype=jnp.float32).astype(jnp.bfloat16)
    h2 = jax.random.normal(k2, (B, S, H), dtype=jnp.float32).astype(jnp.bfloat16)

    # attention masks with trailing padding (valid lengths 6/8 and 4/5)
    lens1 = jnp.array([6, 8], dtype=jnp.int32)
    lens2 = jnp.array([4, 5], dtype=jnp.int32)
    idx = jnp.arange(S)[None, :]
    m1 = (idx < lens1[:, None]).astype(jnp.float32)
    m2 = (idx < lens2[:, None]).astype(jnp.float32)

    # deterministic init of nn.Linear(3H, 2), PyTorch-style uniform bound
    bound = 1.0 / jnp.sqrt(3.0 * H)
    w = jax.random.uniform(kw, (3 * H, 2), jnp.float32, -bound, bound)
    b = jax.random.uniform(kb, (1, 2), jnp.float32, -bound, bound)

    out = sentence_bert_head(h1, h2, m1, m2, w, b)
    out = jax.block_until_ready(out)

    ref = reference_head(h1, h2, m1, m2, w, b)
    assert out.shape == (B, 2)
    assert jnp.allclose(out, ref, atol=5e-3, rtol=5e-3), (out, ref)

    print("KERNEL_OK")
</pallas_src>

<mosaic_0001>
module attributes {stable_mosaic.version = 11 : i64} {
  func.func @sbert_head_kernel(%arg0: i32, %arg1: i32, %arg2: memref<1xi32, #tpu.memory_space<smem>>, %arg3: memref<1xi32, #tpu.memory_space<smem>>, %arg4: memref<2x1xi32, #tpu.memory_space<vmem>>, %arg5: memref<2x1xi32, #tpu.memory_space<vmem>>, %arg6: memref<2x8x32xbf16, #tpu.memory_space<vmem>>, %arg7: memref<2x8x32xbf16, #tpu.memory_space<vmem>>, %arg8: memref<96x2xf32, #tpu.memory_space<vmem>>, %arg9: memref<1x2xf32, #tpu.memory_space<vmem>>, %arg10: memref<2x2xf32, #tpu.memory_space<vmem>>, %arg11: memref<2x32xf32, #tpu.memory_space<vmem>>, %arg12: memref<2x32xf32, #tpu.memory_space<vmem>>) attributes {dimension_semantics = [#tpu.dimension_semantics<parallel>, #tpu.dimension_semantics<arbitrary>], iteration_bounds = array<i64: 1, 1>, scalar_prefetch = 2 : i64, scratch_operands = 2 : i64, tpu.core_type = #tpu.core_type<tc>, window_params = [{transform_indices = @transform_0, window_bounds = array<i64: 2, 1>}, {transform_indices = @transform_1, window_bounds = array<i64: 2, 1>}, {transform_indices = @transform_2, window_bounds = array<i64: 2, 8, 32>}, {transform_indices = @transform_3, window_bounds = array<i64: 2, 8, 32>}, {pipeline_mode = #tpu.pipeline_mode<synchronous>, transform_indices = @transform_4, window_bounds = array<i64: 96, 2>}, {pipeline_mode = #tpu.pipeline_mode<synchronous>, transform_indices = @transform_5, window_bounds = array<i64: 1, 2>}, {transform_indices = @transform_6, window_bounds = array<i64: 2, 2>}]} {
    %c0_i32 = arith.constant 0 : i32
    %0 = arith.cmpi eq, %arg1, %c0_i32 : i32
    %1 = arith.extui %0 : i1 to i32
    %c0_i32_0 = arith.constant 0 : i32
    %2 = arith.cmpi ne, %1, %c0_i32_0 : i32
    scf.if %2 {
      %cst_21 = arith.constant 0.000000e+00 : f32
      %38 = vector.broadcast %cst_21 : f32 to vector<2x32xf32>
      %c0_22 = arith.constant 0 : index
      %c0_23 = arith.constant 0 : index
      %39 = vector.load %arg11[%c0_22, %c0_23] : memref<2x32xf32, #tpu.memory_space<vmem>>, vector<2x32xf32>
      tpu.vector_store %arg11[%c0_22, %c0_23], %38 {strides = array<i32>} : memref<2x32xf32, #tpu.memory_space<vmem>>, vector<2x32xf32>,
      %cst_24 = arith.constant 0.000000e+00 : f32
      %40 = vector.broadcast %cst_24 : f32 to vector<2x32xf32>
      %c0_25 = arith.constant 0 : index
      %c0_26 = arith.constant 0 : index
      %41 = vector.load %arg12[%c0_25, %c0_26] : memref<2x32xf32, #tpu.memory_space<vmem>>, vector<2x32xf32>
      tpu.vector_store %arg12[%c0_25, %c0_26], %40 {strides = array<i32>} : memref<2x32xf32, #tpu.memory_space<vmem>>, vector<2x32xf32>,
    } else {
    }
    %c8_i32 = arith.constant 8 : i32
    %3 = arith.muli %arg1, %c8_i32 : i32
    %4 = tpu.iota {dimensions = array<i32: 1>} : vector<2x8xi32>
    %5 = vector.broadcast %3 : i32 to vector<2x8xi32>
    %6 = arith.addi %5, %4 : vector<2x8xi32>
    %c0 = arith.constant 0 : index
    %c0_1 = arith.constant 0 : index
    %7 = vector.load %arg4[%c0, %c0_1] : memref<2x1xi32, #tpu.memory_space<vmem>>, vector<2x1xi32>
    %8 = vector.broadcast %7 : vector<2x1xi32> to vector<2x8xi32>
    %9 = arith.cmpi slt, %6, %8 : vector<2x8xi32>
    %10 = arith.extui %9 : vector<2x8xi1> to vector<2x8xi32>
    %11 = arith.sitofp %10 : vector<2x8xi32> to vector<2x8xf32>
    %c0_2 = arith.constant 0 : index
    %c0_3 = arith.constant 0 : index
    %12 = vector.load %arg5[%c0_2, %c0_3] : memref<2x1xi32, #tpu.memory_space<vmem>>, vector<2x1xi32>
    %13 = vector.broadcast %12 : vector<2x1xi32> to vector<2x8xi32>
    %14 = arith.cmpi slt, %6, %13 : vector<2x8xi32>
    %15 = arith.extui %14 : vector<2x8xi1> to vector<2x8xi32>
    %16 = arith.sitofp %15 : vector<2x8xi32> to vector<2x8xf32>
    %c0_4 = arith.constant 0 : index
    %c0_5 = arith.constant 0 : index
    %c0_6 = arith.constant 0 : index
    %17 = vector.load %arg6[%c0_4, %c0_5, %c0_6] : memref<2x8x32xbf16, #tpu.memory_space<vmem>>, vector<2x8x32xbf16>
    %18 = arith.extf %17 : vector<2x8x32xbf16> to vector<2x8x32xf32>
    %c0_7 = arith.constant 0 : index
    %c0_8 = arith.constant 0 : index
    %c0_9 = arith.constant 0 : index
    %19 = vector.load %arg7[%c0_7, %c0_8, %c0_9] : memref<2x8x32xbf16, #tpu.memory_space<vmem>>, vector<2x8x32xbf16>
    %20 = arith.extf %19 : vector<2x8x32xbf16> to vector<2x8x32xf32>
    %c0_10 = arith.constant 0 : index
    %c0_11 = arith.constant 0 : index
    %21 = vector.load %arg11[%c0_10, %c0_11] : memref<2x32xf32, #tpu.memory_space<vmem>>, vector<2x32xf32>
    %22 = vector.shape_cast %11 : vector<2x8xf32> to vector<2x8x1xf32>
    %23 = vector.broadcast %22 : vector<2x8x1xf32> to vector<2x8x32xf32>
    %24 = arith.mulf %18, %23 : vector<2x8x32xf32>
    %cst = arith.constant dense<0.000000e+00> : vector<2x32xf32>
    %25 = vector.multi_reduction <add>, %24, %cst [1] : vector<2x8x32xf32> to vector<2x32xf32>
    %26 = arith.addf %21, %25 : vector<2x32xf32>
    %c0_12 = arith.constant 0 : index
    %c0_13 = arith.constant 0 : index
    %27 = vector.load %arg11[%c0_12, %c0_13] : memref<2x32xf32, #tpu.memory_space<vmem>>, vector<2x32xf32>
    tpu.vector_store %arg11[%c0_12, %c0_13], %26 {strides = array<i32>} : memref<2x32xf32, #tpu.memory_space<vmem>>, vector<2x32xf32>,
    %c0_14 = arith.constant 0 : index
    %c0_15 = arith.constant 0 : index
    %28 = vector.load %arg12[%c0_14, %c0_15] : memref<2x32xf32, #tpu.memory_space<vmem>>, vector<2x32xf32>
    %29 = vector.shape_cast %16 : vector<2x8xf32> to vector<2x8x1xf32>
    %30 = vector.broadcast %29 : vector<2x8x1xf32> to vector<2x8x32xf32>
    %31 = arith.mulf %20, %30 : vector<2x8x32xf32>
    %cst_16 = arith.constant dense<0.000000e+00> : vector<2x32xf32>
    %32 = vector.multi_reduction <add>, %31, %cst_16 [1] : vector<2x8x32xf32> to vector<2x32xf32>
    %33 = arith.addf %28, %32 : vector<2x32xf32>
    %c0_17 = arith.constant 0 : index
    %c0_18 = arith.constant 0 : index
    %34 = vector.load %arg12[%c0_17, %c0_18] : memref<2x32xf32, #tpu.memory_space<vmem>>, vector<2x32xf32>
    tpu.vector_store %arg12[%c0_17, %c0_18], %33 {strides = array<i32>} : memref<2x32xf32, #tpu.memory_space<vmem>>, vector<2x32xf32>,
    %c0_i32_19 = arith.constant 0 : i32
    %35 = arith.cmpi eq, %arg1, %c0_i32_19 : i32
    %36 = arith.extui %35 : i1 to i32
    %c0_i32_20 = arith.constant 0 : i32
    %37 = arith.cmpi ne, %36, %c0_i32_20 : i32
    scf.if %37 {
      %c0_21 = arith.constant 0 : index
      %c0_22 = arith.constant 0 : index
      %38 = vector.load %arg4[%c0_21, %c0_22] : memref<2x1xi32, #tpu.memory_space<vmem>>, vector<2x1xi32>
      %39 = arith.sitofp %38 : vector<2x1xi32> to vector<2x1xf32>
      %cst_23 = arith.constant 1.000000e+00 : f32
      %40 = vector.broadcast %cst_23 : f32 to vector<2x1xf32>
      %41 = arith.maximumf %39, %40 : vector<2x1xf32>
      %cst_24 = arith.constant 1.000000e+00 : f32
      %42 = vector.broadcast %cst_24 : f32 to vector<2x1xf32>
      %43 = arith.divf %42, %41 : vector<2x1xf32>
      %c0_25 = arith.constant 0 : index
      %c0_26 = arith.constant 0 : index
      %44 = vector.load %arg5[%c0_25, %c0_26] : memref<2x1xi32, #tpu.memory_space<vmem>>, vector<2x1xi32>
      %45 = arith.sitofp %44 : vector<2x1xi32> to vector<2x1xf32>
      %cst_27 = arith.constant 1.000000e+00 : f32
      %46 = vector.broadcast %cst_27 : f32 to vector<2x1xf32>
      %47 = arith.maximumf %45, %46 : vector<2x1xf32>
      %cst_28 = arith.constant 1.000000e+00 : f32
      %48 = vector.broadcast %cst_28 : f32 to vector<2x1xf32>
      %49 = arith.divf %48, %47 : vector<2x1xf32>
      %c0_29 = arith.constant 0 : index
      %c0_30 = arith.constant 0 : index
      %50 = vector.load %arg11[%c0_29, %c0_30] : memref<2x32xf32, #tpu.memory_space<vmem>>, vector<2x32xf32>
      %51 = vector.broadcast %43 : vector<2x1xf32> to vector<2x32xf32>
      %52 = arith.mulf %50, %51 : vector<2x32xf32>
      %c0_31 = arith.constant 0 : index
      %c0_32 = arith.constant 0 : index
      %53 = vector.load %arg12[%c0_31, %c0_32] : memref<2x32xf32, #tpu.memory_space<vmem>>, vector<2x32xf32>
      %54 = vector.broadcast %49 : vector<2x1xf32> to vector<2x32xf32>
      %55 = arith.mulf %53, %54 : vector<2x32xf32>
      %56 = arith.subf %52, %55 : vector<2x32xf32>
      %57 = math.absf %56 : vector<2x32xf32>
      %c0_33 = arith.constant 0 : index
      %c0_34 = arith.constant 0 : index
      %58 = vector.load %arg8[%c0_33, %c0_34] : memref<96x2xf32, #tpu.memory_space<vmem>>, vector<32x2xf32>
      %cst_35 = arith.constant dense<0.000000e+00> : vector<2x2xf32>
      %59 = tpu.matmul %52, %58, %cst_35 {dimension_numbers = #tpu.dot_dimension_numbers<[1], [0], [0], [1], [0, 0, 1, 1], [], []>} : vector<2x32xf32>, vector<32x2xf32>, vector<2x2xf32> -> vector<2x2xf32>
      %c32 = arith.constant 32 : index
      %c0_36 = arith.constant 0 : index
      %60 = vector.load %arg8[%c32, %c0_36] : memref<96x2xf32, #tpu.memory_space<vmem>>, vector<32x2xf32>
      %cst_37 = arith.constant dense<0.000000e+00> : vector<2x2xf32>
      %61 = tpu.matmul %55, %60, %cst_37 {dimension_numbers = #tpu.dot_dimension_numbers<[1], [0], [0], [1], [0, 0, 1, 1], [], []>} : vector<2x32xf32>, vector<32x2xf32>, vector<2x2xf32> -> vector<2x2xf32>
      %62 = arith.addf %59, %61 : vector<2x2xf32>
      %c64 = arith.constant 64 : index
      %c0_38 = arith.constant 0 : index
      %63 = vector.load %arg8[%c64, %c0_38] : memref<96x2xf32, #tpu.memory_space<vmem>>, vector<32x2xf32>
      %cst_39 = arith.constant dense<0.000000e+00> : vector<2x2xf32>
      %64 = tpu.matmul %57, %63, %cst_39 {dimension_numbers = #tpu.dot_dimension_numbers<[1], [0], [0], [1], [0, 0, 1, 1], [], []>} : vector<2x32xf32>, vector<32x2xf32>, vector<2x2xf32> -> vector<2x2xf32>
      %65 = arith.addf %62, %64 : vector<2x2xf32>
      %c0_40 = arith.constant 0 : index
      %c0_41 = arith.constant 0 : index
      %66 = vector.load %arg9[%c0_40, %c0_41] : memref<1x2xf32, #tpu.memory_space<vmem>>, vector<1x2xf32>
      %67 = vector.broadcast %66 : vector<1x2xf32> to vector<2x2xf32>
      %68 = arith.addf %65, %67 : vector<2x2xf32>
      %c0_42 = arith.constant 0 : index
      %c0_43 = arith.constant 0 : index
      %69 = vector.load %arg10[%c0_42, %c0_43] : memref<2x2xf32, #tpu.memory_space<vmem>>, vector<2x2xf32>
      tpu.vector_store %arg10[%c0_42, %c0_43], %68 {strides = array<i32>} : memref<2x2xf32, #tpu.memory_space<vmem>>, vector<2x2xf32>,
    } else {
    }
    return
  }
  func.func @transform_0(%arg0: i32, %arg1: i32, %arg2: memref<1xi32, #tpu.memory_space<smem>>, %arg3: memref<1xi32, #tpu.memory_space<smem>>) -> (i32, i32) {
    %c0_i32 = arith.constant 0 : i32
    %c0_i32_0 = arith.constant 0 : i32
    return %arg0, %c0_i32 : i32, i32
  }
  func.func @transform_1(%arg0: i32, %arg1: i32, %arg2: memref<1xi32, #tpu.memory_space<smem>>, %arg3: memref<1xi32, #tpu.memory_space<smem>>) -> (i32, i32) {
    %c0_i32 = arith.constant 0 : i32
    %c0_i32_0 = arith.constant 0 : i32
    return %arg0, %c0_i32 : i32, i32
  }
  func.func @transform_2(%arg0: i32, %arg1: i32, %arg2: memref<1xi32, #tpu.memory_space<smem>>, %arg3: memref<1xi32, #tpu.memory_space<smem>>) -> (i32, i32, i32) {
    %0 = arith.index_cast %arg0 : i32 to index
    %1 = memref.load %arg2[%0] : memref<1xi32, #tpu.memory_space<smem>>
    %c1_i32 = arith.constant 1 : i32
    %2 = arith.subi %1, %c1_i32 : i32
    %3 = arith.minsi %arg1, %2 : i32
    %c0_i32 = arith.constant 0 : i32
    %4 = arith.maxsi %3, %c0_i32 : i32
    %c0_i32_0 = arith.constant 0 : i32
    %c0_i32_1 = arith.constant 0 : i32
    return %arg0, %4, %c0_i32_0 : i32, i32, i32
  }
  func.func @transform_3(%arg0: i32, %arg1: i32, %arg2: memref<1xi32, #tpu.memory_space<smem>>, %arg3: memref<1xi32, #tpu.memory_space<smem>>) -> (i32, i32, i32) {
    %0 = arith.index_cast %arg0 : i32 to index
    %1 = memref.load %arg3[%0] : memref<1xi32, #tpu.memory_space<smem>>
    %c1_i32 = arith.constant 1 : i32
    %2 = arith.subi %1, %c1_i32 : i32
    %3 = arith.minsi %arg1, %2 : i32
    %c0_i32 = arith.constant 0 : i32
    %4 = arith.maxsi %3, %c0_i32 : i32
    %c0_i32_0 = arith.constant 0 : i32
    %c0_i32_1 = arith.constant 0 : i32
    return %arg0, %4, %c0_i32_0 : i32, i32, i32
  }
  func.func @transform_4(%arg0: i32, %arg1: i32, %arg2: memref<1xi32, #tpu.memory_space<smem>>, %arg3: memref<1xi32, #tpu.memory_space<smem>>) -> (i32, i32) {
    %c0_i32 = arith.constant 0 : i32
    %c0_i32_0 = arith.constant 0 : i32
    %c0_i32_1 = arith.constant 0 : i32
    return %c0_i32, %c0_i32_0 : i32, i32
  }
  func.func @transform_5(%arg0: i32, %arg1: i32, %arg2: memref<1xi32, #tpu.memory_space<smem>>, %arg3: memref<1xi32, #tpu.memory_space<smem>>) -> (i32, i32) {
    %c0_i32 = arith.constant 0 : i32
    %c0_i32_0 = arith.constant 0 : i32
    %c0_i32_1 = arith.constant 0 : i32
    return %c0_i32, %c0_i32_0 : i32, i32
  }
  func.func @transform_6(%arg0: i32, %arg1: i32, %arg2: memref<1xi32, #tpu.memory_space<smem>>, %arg3: memref<1xi32, #tpu.memory_space<smem>>) -> (i32, i32) {
    %c0_i32 = arith.constant 0 : i32
    %c0_i32_0 = arith.constant 0 : i32
    return %arg0, %c0_i32 : i32, i32
  }
}

</mosaic_0001>

<bundles_post_ra>
// kernel: tpu_custom_call.1
= control target key start
LH: loop header
LB: loop body
LE: loop exit
PB: predicated region body
PF: predicated region fallthrough
CT: control target
= control target key end

     0   :  { %v651_v1 = vmov 0   ;;  %s797_s0 = inlined_call_operand.<no memory space> [shape: s32[1], index: 0, kind: input, shape index: {}]   ;;  %s798_s1 = inlined_call_operand.<no memory space> [shape: s32[1], index: 1, kind: input, shape index: {}]   ;;  %s799_s2 = inlined_call_operand.vmem [shape: s32[2,1], index: 2, kind: input, shape index: {}]   ;;  %s800_s3 = inlined_call_operand.vmem [shape: s32[2,1], index: 3, kind: input, shape index: {}]   ;;  %s801_s4 = inlined_call_operand.vmem [shape: bf16[2,8,32], index: 4, kind: input, shape index: {}]   ;;  %s802_s5 = inlined_call_operand.vmem [shape: bf16[2,8,32], index: 5, kind: input, shape index: {}]   ;;  %s803_s6 = inlined_call_operand.vmem [shape: f32[96,2], index: 6, kind: input, shape index: {}]   ;;  %s804_s7 = inlined_call_operand.vmem [shape: f32[1,2], index: 7, kind: input, shape index: {}]   ;;  %s805_s8 = inlined_call_operand.hbm [shape: f32[2,2], index: 8, kind: output, shape index: {}]  }
   0x1   :  { %v131_v0 = vld [vmem:[%s800_s3] sm:$0x3]  ;;  %621 = vset.pattern.permute.xlu0 %v651_v1  ;;  %622 = vset.pattern.permute.xlu1 %v651_v1 }
   0x2   :  { %15 = vsyncpa [#allocation8], 0  ;;  %133 = vperm.xlu0 %621, %v131_v0   ;;  %v124_v2 = vld [vmem:[%s799_s2] sm:$0x3]  ;;  %v120_v4 = vlaneseq  ;;  %v652_v14 = vmov 0.0   ;;  %vm116_vm1 = vcmask 254976  }
   0x3   :  { %v231_v3 = vld [vmem:[%s800_s3] sm:$0x3]  ;;  %118 = vst.msk [vmem:[#allocation3] sm:$0x3] %vm116_vm1, %v652_v14  ;;  %117 = vst.msk [vmem:[#allocation2] sm:$0x3] %vm116_vm1, %v652_v14 }
   0x4   :  { %v232_v5 = vcvt.s32.f32 %v231_v3  ;;  %v226_v6 = vld [vmem:[%s799_s2] sm:$0x3]  ;;  %v148_v7 = vshrl.u32 %v120_v4, 7  ;;  %v121_v10 = vand.u32 127, %v120_v4  ;;  %v257_v26 = vld [vmem:[%s803_s6 + $0x28] sm:$0xff]  ;;  %v653_v28 = vmov 0.0|0.0  }
   0x5   :  { %v227_v9 = vcvt.s32.f32 %v226_v6  ;;  %v256_v25 = vld [vmem:[%s803_s6 + $0x20] sm:$0xff]  ;;  %598 = vmatprep.subr.bf16.mxu0 %v653_v28  ;;  %604 = vmatprep.subr.bf16.mxu1 %v653_v28  ;;  %v258_v29 = vld [vmem:[%s803_s6 + $0x30] sm:$0xff]  ;;  %v259_v30 = vld [vmem:[%s803_s6 + $0x38] sm:$0xff]  ;;  %vm654_vm3 = vmmov 0   ;;  %vm163_vm4 = vcmask 261120   ;;  %vm180_vm5 = vcmask 1041409  }
   0x6   :  { %126 = vperm.xlu0 %621, %v124_v2   ;;  %v233_v8 = vmax.f32 %v232_v5, 1.0  ;;  %v149_v11 = vsub.s32 0, %v148_v7  ;;  %v156_v17 = vsub.s32 1, %v148_v7  ;;  %v599_v27 = vpack.c.bf16 %v257_v26, %v256_v25  ;;  %v252_v31 = vld [vmem:[%s803_s6] sm:$0xff]  ;;  %v253_v33 = vld [vmem:[%s803_s6 + $0x8] sm:$0xff]  ;;  %v254_v35 = vld [vmem:[%s803_s6 + $0x10] sm:$0xff]  ;;  %573 = vmatprep.mubr.msk.f32.mxu0 %vm654_vm3, %v652_v14 }
   0x7   :  { %v228_v13 = vmax.f32 %v227_v9, 1.0  ;;  %v602_v32 = vpack.c.bf16 %v259_v30, %v258_v29  ;;  %v605_v34 = vpack.c.bf16 %v253_v33, %v252_v31  ;;  %v255_v36 = vld [vmem:[%s803_s6 + $0x18] sm:$0xff]  ;;  %584 = vmatprep.mubr.msk.f32.mxu1 %vm654_vm3, %v652_v14  ;;  %v547_v38 = vld [vmem:[%s802_s5] sm:$0xff]   ;;  %v408_v30 = vld [vmem:[%s803_s6 + $0x50] sm:$0xff]  ;;  %s655_s3 = smov [#allocation7]   ;;  %vm492_vm6 = vcmask 9216  }
   0x8   :  { %623 = vrcp.f32 %v233_v8  ;;  %600 = vmatpush3.bf16.msra.mxu0 %v599_v27  ;;  %v608_v37 = vpack.c.bf16 %v255_v36, %v254_v35  ;;  %v548_v39 = vunpack.c.l.bf16 %v547_v38  ;;  %v543_v40 = vld [vmem:[%s801_s4] sm:$0xff]   ;;  %v549_v43 = vunpack.c.h.bf16 %v547_v38  ;;  %v409_v31 = vld [vmem:[%s803_s6 + $0x58] sm:$0xff]  ;;  %s500_s11 = sshll.u32 %s655_s3, 4  ;;  %s501_s11 = int_to_ptr.vmem [resolvable:$true] %s500_s11 }
   0x9   :  { %625 = vrcp.f32 %v228_v13  ;;  %601 = vmatprep.subr.bf16.mxu0 %v653_v28  ;;  %606 = vmatpush3.bf16.msra.mxu1 %v605_v34  ;;  %v544_v44 = vunpack.c.l.bf16 %v543_v40  ;;  %v545_v51 = vunpack.c.h.bf16 %v543_v40  ;;  %v614_v34 = vpack.c.bf16 %v409_v31, %v408_v30  ;;  %s627_s12 = scalar_lea.vmem %s501_s11, 32  ;;  %p632_p1 = scmp.lt.s32.totalorder %s501_s11, %s501_s11 }
   0xa   :  { %607 = vmatprep.subr.bf16.mxu1 %v653_v28  ;;  %p628_p0 = scmp.ne.s32.totalorder %s501_s11, %s627_s12  ;;  %p633_p2 = scmp.lt.s32.totalorder %s627_s12, %s627_s12 }
   0xc   :  { %603 = vmatpush3.bf16.msra.mxu0 %v602_v32  ;;  %p634_p3 = por %p633_p2, %p632_p1 }
   0xd   :  { %610 = vmatprep.subr.bf16.mxu0 %v653_v28  ;;  %609 = vmatpush3.bf16.msra.mxu1 %v608_v37 }
   0xe   :  { %p635_p4 = pnand %p634_p3, %p628_p0 }
  0x12   :  { %v624_v22 = vpop.eup %623 }
  0x13   :  { %v626_v24 = vpop.eup %625 }
  0x81   :  { %v134_v12 = vpop.permute.xlu0 %133 }
  0x82   :  { %vm135_vm0 = vcmp.lt.s32.totalorder %v121_v10, %v134_v12 }
  0x83   :  { %v537_v15 = vsel %vm135_vm0, 1.0, %v652_v14 }
  0x84   :  { %v190_v16 = vrot.slane %v537_v15, %v149_v11  ;;  %v197_v20 = vrot.slane %v537_v15, %v156_v17 }
  0x85   :  { %v127_v18 = vpop.permute.xlu0 %126 }
  0x86   :  { %vm128_vm2 = vcmp.lt.s32.totalorder %v121_v10, %v127_v18  ;;  %192 = vbcast.lane.b32.xlu1 %v190_v16, 256  ;;  %v186_v10 = vld [vmem:[#allocation3] sm:$0x3] }
  0x87   :  { %v536_v19 = vsel %vm128_vm2, 1.0, %v652_v14 }
  0x88   :  { %v150_v21 = vrot.slane %v536_v19, %v149_v11  ;;  %v157_v23 = vrot.slane %v536_v19, %v156_v17  ;;  %v146_v19 = vld [vmem:[#allocation2] sm:$0x3] }
  0x8a   :  { %199 = vbcast.lane.b32.xlu1 %v197_v20, 256  ;;  %152 = vbcast.lane.b32.xlu0 %v150_v21, 256 }
  0x8e   :  { %159 = vbcast.lane.b32.xlu1 %v157_v23, 256  ;;  %246 = vperm.xlu0 %621, %v624_v22   ;;  %v406_v23 = vld [vmem:[%s803_s6 + $0x40] sm:$0xff] }
  0x92   :  { %239 = vperm.xlu1 %622, %v626_v24   ;;  %v407_v24 = vld [vmem:[%s803_s6 + $0x48] sm:$0xff] }
  0x93   :  { %v611_v27 = vpack.c.bf16 %v407_v24, %v406_v23 }
  0xf8   :  { %v193_v41 = vpop.permute.xlu1 %192 }
  0xf9   :  { %v201_v42 = vmul.f32 %v548_v39, %v193_v41 }
  0xfb   :  { %v203_v45 = vsel %vm163_vm4, %v201_v42, 0.0 }
  0xfc   :  { %v204_v46 = vrot.slane %v203_v45, 4  ;;  %v200_v47 = vpop.permute.xlu1 %199  ;;  %v153_v48 = vpop.permute.xlu0 %152 }
  0xfd   :  { %v202_v49 = vmul.f32 %v549_v43, %v200_v47  ;;  %v161_v50 = vmul.f32 %v544_v44, %v153_v48 }
  0xfe   :  { %v205_v52 = vadd.f32 %v204_v46, %v203_v45 }
  0xff   :  { %v210_v53 = vsel %vm163_vm4, %v202_v49, 0.0  ;;  %v164_v54 = vsel %vm163_vm4, %v161_v50, 0.0 }
 0x100   :  { %v206_v55 = vrot.slane %v205_v52, 2  ;;  %v211_v56 = vrot.slane %v210_v53, 4  ;;  %v165_v57 = vrot.slane %v164_v54, 4  ;;  %v160_v58 = vpop.permute.xlu1 %159 }
 0x101   :  { %v162_v59 = vmul.f32 %v545_v51, %v160_v58 }
 0x102   :  { %v207_v60 = vadd.f32 %v206_v55, %v205_v52  ;;  %v212_v61 = vadd.f32 %v211_v56, %v210_v53  ;;  %v166_v62 = vadd.f32 %v165_v57, %v164_v54 }
 0x103   :  { %v171_v63 = vsel %vm163_vm4, %v162_v59, 0.0 }
 0x104   :  { %v213_v0 = vrot.slane %v212_v61, 2  ;;  %v167_v1 = vrot.slane %v166_v62, 2  ;;  %v172_v2 = vrot.slane %v171_v63, 4  ;;  %v208_v3 = vrot.slane %v207_v60, 1 }
 0x106   :  { %v214_v4 = vadd.f32 %v213_v0, %v212_v61  ;;  %v168_v5 = vadd.f32 %v167_v1, %v166_v62  ;;  %v173_v6 = vadd.f32 %v172_v2, %v171_v63  ;;  %v209_v9 = vadd.f32 %v208_v3, %v207_v60 }
 0x108   :  { %v215_v7 = vrot.slane %v214_v4, 1  ;;  %v174_v8 = vrot.slane %v173_v6, 2  ;;  %v169_v12 = vrot.slane %v168_v5, 1 }
 0x10a   :  { %v216_v11 = vadd.f32 %v215_v7, %v214_v4  ;;  %v175_v13 = vadd.f32 %v174_v8, %v173_v6  ;;  %v170_v18 = vadd.f32 %v169_v12, %v168_v5 }
 0x10c   :  { %v219_v15 = vsel %vm180_vm5, %v216_v11, %v209_v9  ;;  %v176_v16 = vrot.slane %v175_v13, 1 }
 0x10d   :  { %v221_v17 = vadd.f32 %v219_v15, %v186_v10  ;;  %v247_v25 = vpop.permute.xlu0 %246 }
 0x10e   :  { %v177_v20 = vadd.f32 %v176_v16, %v175_v13 }
 0x10f   :  { %222 = vst.msk [vmem:[#allocation3] sm:$0x3] %vm116_vm1, %v221_v17 }
 0x110   :  { %v181_v21 = vsel %vm180_vm5, %v177_v20, %v170_v18 }
 0x111   :  { %v183_v22 = vadd.f32 %v181_v21, %v146_v19  ;;  %v240_v32 = vpop.permute.xlu1 %239 }
 0x113   :  { %185 = vst.msk [vmem:[#allocation2] sm:$0x3] %vm116_vm1, %v183_v22 }
 0x116   :  { %v243_v26 = vld [vmem:[#allocation3] sm:$0x3] }
 0x117   :  { %v249_v29 = vmul.f32 %v247_v25, %v243_v26 }
 0x119   :  { %574 = vmatmul.mubr.msk.f32.vlgmr.msra.gmra.mrb[0].mxu0 %vm163_vm4, %v249_v29 }
 0x11a   :  { %v236_v33 = vld [vmem:[#allocation2] sm:$0x3]  ;;  %612 = vmatpush3.bf16.msra.mxu0 %v611_v27  ;;  %595 = vmatprep.mubr.msk.f32.mxu0 %vm654_vm3, %v652_v14 }
 0x11b   :  { %v242_v35 = vmul.f32 %v240_v32, %v236_v33  ;;  %613 = vmatprep.subr.bf16.mxu0 %v653_v28  ;;  %v541_v14 = vld [vmem:[%s804_s7] ss:$0 sm:$0xff] }
 0x11d   :  { %v250_v36 = vsub.f32 %v242_v35, %v249_v29  ;;  %585 = vmatmul.mubr.msk.f32.vlgmr.msra.gmra.mrb[0].mxu1 %vm163_vm4, %v242_v35 }
 0x11e   :  { %615 = vmatpush3.bf16.msra.mxu0 %v614_v34 }
 0x11f   :  { %v251_v37 = vand.u32 2147483647, %v250_v36 }
 0x121   :  { %596 = vmatmul.mubr.msk.f32.vlgmr.msra.gmra.mrb[2].mxu0 %vm163_vm4, %v251_v37 }
 0x1ec   :  { %v329_v38 = vpop.f32.mrb[0].mxu0 }
 0x1ed   :  { %v575_v39 = vpop.f32.mrb[1].mxu0 }
 0x1f0   :  { %v402_v40 = vpop.f32.mrb[0].mxu1 }
 0x1f1   :  { %v403_v41 = vadd.f32 %v402_v40, %v329_v38  ;;  %v586_v42 = vpop.f32.mrb[1].mxu1 }
 0x1f4   :  { %v479_v43 = vpop.f32.mrb[2].mxu0 }
 0x1f5   :  { %v483_v28 = vadd.f32 %v479_v43, %v403_v41  ;;  %v597_v44 = vpop.f32.mrb[3].mxu0 }
 0x1f7   :  { %v491_v45 = vadd.f32 %v541_v14, %v483_v28 }
 0x1f9   :  { %493 = vst.msk [vmem:[#allocation7] sm:$0x3] %vm492_vm6, %v491_v45 }
 0x1fa   :  { %638 = shalt.err (!%p635_p4)
}
 0x1fb   :  { %s639_s15 = scalar_lea.hbm %s805_s8, 32 }
 0x1fc   :  { %p640_p5 = scmp.ne.s32.totalorder %s805_s8, %s639_s15  ;;  %p643_p6 = scmp.lt.u32.totalorder %s639_s15, %s805_s8 }
 0x1fe   :  { %p645_p7 = pnand %p643_p6, %p640_p5 }
 0x200   :  { %648 = shalt.err (!%p645_p7)
}
 0x201   :  { %503 = dma.vmem_to_hbm [thread:$0]  %s501_s11, 32, %s805_s8, [#allocation8]  }
 0x202   :  { %649 = dma.done.wait [#allocation8], 32  }
 0x203   :  { %650 = vsyncadd [#allocation8], 4294967264 }
 0x204   :  { %507 = vsyncpa [#allocation8], 1 }

</bundles_post_ra>
